<compile_context>
chip_gen: v6e
topology: v6e:2x2x1
jax: 0.10.0
libtpu: 0.0.40
codegen_flags: <defaults>
</compile_context>

<pallas_src>
import math
from functools import partial

import jax
import jax.numpy as jnp
from jax import lax
from jax.experimental import pallas as pl
from jax.experimental.pallas import tpu as pltpu

K_SIZE = 4
STRIDE = 2
PAD = 1
EPS = 1e-5          # InstanceNorm2d default eps
NEG_SLOPE = 0.2     # LeakyReLU slope
LANE = 128


# ------------------- pass 1: conv (4 MXU taps, f32 acc) + streamed per-channel stats -------------------
def _conv_stats_kernel(za_ref, zb_ref, w_ref, y_ref, sum_ref, ssq_ref, acc_ref,
                       *, tile_rows, wo, c4, tile_cout):
    t = pl.program_id(2)
    m = tile_rows * wo
    m_top = (tile_rows - 1) * wo

    za = za_ref[0]                      # (tile_rows, Wz, C4)   compute dtype (bf16 default)
    zb = zb_ref[0]                      # (1,        Wz, C4)    1-row halo block

    # Hoisted width-shift (v) slices: the v=1 slice is the only sublane-misaligned copy and is
    # now paid once per grid step instead of once per (u, v) tap.
    za_v0 = za[:, 0:wo, :].reshape(m, c4)
    za_v1 = za[:, 1:wo + 1, :].reshape(m, c4)
    zb_v0 = zb[:, 0:wo, :].reshape(wo, c4)
    zb_v1 = zb[:, 1:wo + 1, :].reshape(wo, c4)

    # u = 0 taps: every output row reads its own za row.
    acc_ref[...] = (
        jnp.dot(za_v0, w_ref[0], preferred_element_type=jnp.float32)
        + jnp.dot(za_v1, w_ref[1], preferred_element_type=jnp.float32))

    # u = 1 taps: output rows 0..tile_rows-2 read za rows 1..tile_rows-1; the last output row
    # reads the 1-row halo block zb.  (Replaces the full-band jnp.concatenate of v1.)
    if tile_rows > 1:
        acc_ref[0:m_top, :] += (
            jnp.dot(za_v0[wo:], w_ref[2], preferred_element_type=jnp.float32)
            + jnp.dot(za_v1[wo:], w_ref[3], preferred_element_type=jnp.float32))
    acc_ref[m_top:m, :] += (
        jnp.dot(zb_v0, w_ref[2], preferred_element_type=jnp.float32)
        + jnp.dot(zb_v1, w_ref[3], preferred_element_type=jnp.float32))

    acc = acc_ref[...]                                           # (M, tile_cout) f32
    y_ref[0] = acc.reshape(tile_rows, wo, tile_cout).astype(y_ref.dtype)

    # Per-channel running sum / sum-of-squares in f32, resident across the t axis.
    @pl.when(t == 0)
    def _():
        sum_ref[...] = jnp.zeros_like(sum_ref)
        ssq_ref[...] = jnp.zeros_like(ssq_ref)

    sum_ref[0] += jnp.sum(acc, axis=0, keepdims=True)            # (1, tile_cout)
    ssq_ref[0] += jnp.sum(acc * acc, axis=0, keepdims=True)      # (1, tile_cout)


# ------------------------- pass 2: normalize + LeakyReLU (elementwise, f32 math) -------------------------
def _norm_lrelu_kernel(y_ref, sum_ref, ssq_ref, o_ref, *, inv_p):
    y = y_ref[0].astype(jnp.float32)                             # (tile_rows, Wo, tile_cout)
    mean = sum_ref[0] * inv_p                                     # (1, tile_cout) f32
    var = jnp.maximum(ssq_ref[0] * inv_p - mean * mean, 0.0)     # biased var, clamped >= 0
    rstd = lax.rsqrt(var + EPS)                                   # EUP slot
    yn = (y - mean.reshape(1, 1, -1)) * rstd.reshape(1, 1, -1)
    o_ref[0] = jnp.where(yn >= 0, yn, NEG_SLOPE * yn).astype(o_ref.dtype)


def _pick_tile_cout(coutp):
    tc = min(coutp, 2 * LANE)
    while coutp % tc:
        tc -= LANE
    return tc


def _pick_tile_rows(ho, wo, tile_cout, acc_budget=512 * 1024, target_m=512):
    # Largest divisor of Ho with (a) f32 accumulator <= acc_budget and (b) M = tile_rows*Wo in
    # the MXU-friendly 256-512 range, preferring 8-aligned M (avoids masked stores / repacks).
    divisors = [d for d in range(1, ho + 1) if ho % d == 0]
    cands = [d for d in divisors
             if d * wo * tile_cout * 4 <= acc_budget and d * wo <= max(target_m, wo)]
    if not cands:
        cands = [1]
    aligned = [d for d in cands if (d * wo) % 8 == 0]
    return max(aligned) if aligned else max(cands)


def unet_down(x_nchw, weight_oikk, *, tile_rows=None, tile_cout=None,
              compute_dtype=jnp.bfloat16, y_dtype=jnp.bfloat16):
    """UNetDown forward.  x_nchw: (N, Cin, H, W); weight_oikk: (Cout, Cin, 4, 4) (PyTorch)."""
    N, Cin, H, W = x_nchw.shape
    Cout = weight_oikk.shape[0]
    assert weight_oikk.shape == (Cout, Cin, K_SIZE, K_SIZE)
    assert H % 2 == 0 and W % 2 == 0, "H, W must be even for k=4, s=2, p=1"

    Ho, Wo = H // 2, W // 2
    Hz, Wz = Ho + 1, Wo + 1          # space-to-depth grid of the padded input
    C4 = 4 * Cin
    Coutp = ((Cout + LANE - 1) // LANE) * LANE
    P = Ho * Wo

    if tile_cout is None:
        tile_cout = _pick_tile_cout(Coutp)
    assert Coutp % tile_cout == 0 and tile_cout % LANE == 0
    CT = Coutp // tile_cout

    if tile_rows is None:
        tile_rows = _pick_tile_rows(Ho, Wo, tile_cout)
    assert Ho % tile_rows == 0
    T = Ho // tile_rows

    # ---- glue: pure layout transform (~1x input bytes; no im2col inflation) ----
    # z[b, i, j, (du*2+dv)*Cin + c] = x_pad[b, 2i+du, 2j+dv, c]
    x_nhwc = jnp.transpose(x_nchw, (0, 2, 3, 1))
    xp = jnp.pad(x_nhwc, ((0, 0), (PAD, PAD), (PAD, PAD), (0, 0)))
    z = xp.reshape(N, Hz, 2, Wz, 2, Cin)
    z = jnp.transpose(z, (0, 1, 3, 2, 4, 5)).reshape(N, Hz, Wz, C4).astype(compute_dtype)

    # Weight: (Cout, Cin, kh, kw) -> (4 taps = (u, v), (du, dv, ci), Coutp), zero-padded lanes.
    w_t = jnp.transpose(weight_oikk, (2, 3, 1, 0))                # (kh, kw, ci, co)
    w_t = w_t.reshape(2, 2, 2, 2, Cin, Cout)                      # (u, du, v, dv, ci, co)
    w2 = jnp.transpose(w_t, (0, 2, 1, 3, 4, 5)).reshape(4, C4, Cout)
    w2 = jnp.pad(w2, ((0, 0), (0, 0), (0, Coutp - Cout))).astype(compute_dtype)

    cb = jnp.dtype(compute_dtype).itemsize
    yb = jnp.dtype(y_dtype).itemsize
    ob = jnp.dtype(x_nchw.dtype).itemsize

    # Derive VMEM limits from actual per-step footprints (double-buffered blocks + f32 scratch).
    p1_step = (2 * tile_rows * Wz * C4 * cb            # za (double-buffered)
               + 2 * Wz * C4 * cb                      # zb halo row
               + 2 * 4 * C4 * tile_cout * cb           # weight tile
               + 2 * tile_rows * Wo * tile_cout * yb   # y tile
               + 4 * 2 * tile_cout * 4                 # stats tiles
               + tile_rows * Wo * tile_cout * 4)       # f32 accumulator scratch
    p2_step = 2 * tile_rows * Wo * tile_cout * (yb + ob) + 4 * 2 * tile_cout * 4
    vmem1 = int(min(max(2 * p1_step + (4 << 20), 32 << 20), 60 << 20))
    vmem2 = int(min(max(2 * p2_step + (4 << 20), 32 << 20), 60 << 20))

    # ---- pass 1: conv matmuls (bf16 operands / f32 acc) + per-channel sum / sumsq ----
    y, ssum, ssq = pl.pallas_call(
        partial(_conv_stats_kernel, tile_rows=tile_rows, wo=Wo, c4=C4, tile_cout=tile_cout),
        out_shape=(
            jax.ShapeDtypeStruct((N, Ho, Wo, Coutp), y_dtype),
            jax.ShapeDtypeStruct((N, 1, Coutp), jnp.float32),
            jax.ShapeDtypeStruct((N, 1, Coutp), jnp.float32),
        ),
        grid=(N, CT, T),
        in_specs=[
            pl.BlockSpec((1, tile_rows, Wz, C4), lambda b, c, t: (b, t, 0, 0)),
            pl.BlockSpec((1, 1, Wz, C4), lambda b, c, t: (b, (t + 1) * tile_rows, 0, 0)),
            pl.BlockSpec((4, C4, tile_cout), lambda b, c, t: (0, 0, c)),
        ],
        out_specs=(
            pl.BlockSpec((1, tile_rows, Wo, tile_cout), lambda b, c, t: (b, t, 0, c)),
            pl.BlockSpec((1, 1, tile_cout), lambda b, c, t: (b, 0, c)),
            pl.BlockSpec((1, 1, tile_cout), lambda b, c, t: (b, 0, c)),
        ),
        scratch_shapes=[pltpu.VMEM((tile_rows * Wo, tile_cout), jnp.float32)],
        compiler_params=pltpu.CompilerParams(
            dimension_semantics=("parallel", "parallel", "arbitrary"),
            vmem_limit_bytes=vmem1,
        ),
        cost_estimate=pl.CostEstimate(
            flops=2 * N * P * (K_SIZE * K_SIZE * Cin) * Cout,
            transcendentals=0,
            bytes_accessed=(CT * N * Hz * Wz * C4 * cb
                            + N * 4 * C4 * Coutp * cb
                            + N * P * Coutp * yb),
        ),
    )(z, z, w2)

    # ---- pass 2: finalize InstanceNorm + LeakyReLU (elementwise) ----
    out_p = pl.pallas_call(
        partial(_norm_lrelu_kernel, inv_p=1.0 / P),
        out_shape=jax.ShapeDtypeStruct((N, Ho, Wo, Coutp), x_nchw.dtype),
        grid=(N, CT, T),
        in_specs=[
            pl.BlockSpec((1, tile_rows, Wo, tile_cout), lambda b, c, t: (b, t, 0, c)),
            pl.BlockSpec((1, 1, tile_cout), lambda b, c, t: (b, 0, c)),
            pl.BlockSpec((1, 1, tile_cout), lambda b, c, t: (b, 0, c)),
        ],
        out_specs=pl.BlockSpec((1, tile_rows, Wo, tile_cout), lambda b, c, t: (b, t, 0, c)),
        compiler_params=pltpu.CompilerParams(
            dimension_semantics=("parallel", "parallel", "parallel"),
            vmem_limit_bytes=vmem2,
        ),
    )(y, ssum, ssq)

    # Slice off padded channels and return NCHW (PyTorch layout).
    return jnp.transpose(out_p[..., :Cout], (0, 3, 1, 2))


def _reference(x_nchw, weight_oikk):
    """Pure-JAX reference: conv + instance norm + leaky relu."""
    y = lax.conv_general_dilated(
        x_nchw, weight_oikk,
        window_strides=(STRIDE, STRIDE),
        padding=((PAD, PAD), (PAD, PAD)),
        dimension_numbers=("NCHW", "OIHW", "NCHW"),
        precision=lax.Precision.HIGHEST,
    )
    mean = jnp.mean(y, axis=(2, 3), keepdims=True)
    var = jnp.mean((y - mean) ** 2, axis=(2, 3), keepdims=True)
    y_n = (y - mean) / jnp.sqrt(var + EPS)
    return jnp.where(y_n >= 0, y_n, NEG_SLOPE * y_n)


if __name__ == "__main__":
    key = jax.random.PRNGKey(0)
    kx, kw = jax.random.split(key)

    N, Cin, H, W = 2, 4, 16, 16
    Cout = 8

    x = jax.random.normal(kx, (N, Cin, H, W), dtype=jnp.float32)
    fan_in = Cin * K_SIZE * K_SIZE
    weight = jax.random.normal(kw, (Cout, Cin, K_SIZE, K_SIZE), dtype=jnp.float32) / math.sqrt(fan_in)

    ref = _reference(x, weight)

    # Production path: bf16 MXU operands + bf16 conv intermediate.
    # tile_rows=4 -> 2 spatial tiles/image: exercises the halo split + streamed-stats path.
    out_bf16 = jax.block_until_ready(unet_down(x, weight, tile_rows=4))
    assert out_bf16.shape == (N, Cout, H // 2, W // 2), out_bf16.shape
    assert jnp.allclose(out_bf16, ref, atol=6e-2, rtol=6e-2), float(jnp.max(jnp.abs(out_bf16 - ref)))

    # f32 path (tighter check of the conv / halo / stats plumbing).
    out_f32 = jax.block_until_ready(
        unet_down(x, weight, tile_rows=4, compute_dtype=jnp.float32, y_dtype=jnp.float32))
    assert jnp.allclose(out_f32, ref, atol=2e-2, rtol=2e-2), float(jnp.max(jnp.abs(out_f32 - ref)))

    print("KERNEL_OK")
</pallas_src>

<mosaic_0001>
module attributes {stable_mosaic.version = 11 : i64} {
  func.func @_conv_stats_kernel(%arg0: i32, %arg1: i32, %arg2: i32, %arg3: memref<1x4x9x16xbf16, #tpu.memory_space<vmem>>, %arg4: memref<1x1x9x16xbf16, #tpu.memory_space<vmem>>, %arg5: memref<4x16x128xbf16, #tpu.memory_space<vmem>>, %arg6: memref<1x4x8x128xbf16, #tpu.memory_space<vmem>>, %arg7: memref<1x1x128xf32, #tpu.memory_space<vmem>>, %arg8: memref<1x1x128xf32, #tpu.memory_space<vmem>>, %arg9: memref<32x128xf32, #tpu.memory_space<vmem>>) attributes {dimension_semantics = [#tpu.dimension_semantics<parallel>, #tpu.dimension_semantics<parallel>, #tpu.dimension_semantics<arbitrary>], iteration_bounds = array<i64: 2, 1, 2>, scalar_prefetch = 0 : i64, scratch_operands = 1 : i64, tpu.core_type = #tpu.core_type<tc>, window_params = [{transform_indices = @transform_0, window_bounds = array<i64: 1, 4, 9, 16>}, {transform_indices = @transform_1, window_bounds = array<i64: 1, 1, 9, 16>}, {transform_indices = @transform_2, window_bounds = array<i64: 4, 16, 128>}, {transform_indices = @transform_3, window_bounds = array<i64: 1, 4, 8, 128>}, {transform_indices = @transform_4, window_bounds = array<i64: 1, 1, 128>}, {transform_indices = @transform_5, window_bounds = array<i64: 1, 1, 128>}]} {
    %c0 = arith.constant 0 : index
    %c0_0 = arith.constant 0 : index
    %c0_1 = arith.constant 0 : index
    %c0_2 = arith.constant 0 : index
    %0 = vector.load %arg3[%c0, %c0_0, %c0_1, %c0_2] : memref<1x4x9x16xbf16, #tpu.memory_space<vmem>>, vector<1x4x9x16xbf16>
    %1 = vector.shape_cast %0 : vector<1x4x9x16xbf16> to vector<4x9x16xbf16>
    %c0_3 = arith.constant 0 : index
    %c0_4 = arith.constant 0 : index
    %c0_5 = arith.constant 0 : index
    %c0_6 = arith.constant 0 : index
    %2 = vector.load %arg4[%c0_3, %c0_4, %c0_5, %c0_6] : memref<1x1x9x16xbf16, #tpu.memory_space<vmem>>, vector<1x1x9x16xbf16>
    %3 = vector.shape_cast %2 : vector<1x1x9x16xbf16> to vector<1x9x16xbf16>
    %4 = vector.extract_strided_slice %1 {offsets = [0, 0, 0], sizes = [4, 8, 16], strides = [1, 1, 1]} : vector<4x9x16xbf16> to vector<4x8x16xbf16>
    %5 = vector.shape_cast %4 : vector<4x8x16xbf16> to vector<32x16xbf16>
    %6 = vector.extract_strided_slice %1 {offsets = [0, 1, 0], sizes = [4, 8, 16], strides = [1, 1, 1]} : vector<4x9x16xbf16> to vector<4x8x16xbf16>
    %7 = vector.shape_cast %6 : vector<4x8x16xbf16> to vector<32x16xbf16>
    %8 = vector.extract_strided_slice %3 {offsets = [0, 0, 0], sizes = [1, 8, 16], strides = [1, 1, 1]} : vector<1x9x16xbf16> to vector<1x8x16xbf16>
    %9 = vector.shape_cast %8 : vector<1x8x16xbf16> to vector<8x16xbf16>
    %10 = vector.extract_strided_slice %3 {offsets = [0, 1, 0], sizes = [1, 8, 16], strides = [1, 1, 1]} : vector<1x9x16xbf16> to vector<1x8x16xbf16>
    %11 = vector.shape_cast %10 : vector<1x8x16xbf16> to vector<8x16xbf16>
    %c0_7 = arith.constant 0 : index
    %c0_8 = arith.constant 0 : index
    %c0_9 = arith.constant 0 : index
    %12 = vector.load %arg5[%c0_7, %c0_8, %c0_9] : memref<4x16x128xbf16, #tpu.memory_space<vmem>>, vector<1x16x128xbf16>
    %13 = vector.shape_cast %12 : vector<1x16x128xbf16> to vector<16x128xbf16>
    %cst = arith.constant dense<0.000000e+00> : vector<32x128xf32>
    %14 = tpu.matmul %5, %13, %cst {dimension_numbers = #tpu.dot_dimension_numbers<[1], [0], [0], [1], [0, 0, 1, 1], [], []>} : vector<32x16xbf16>, vector<16x128xbf16>, vector<32x128xf32> -> vector<32x128xf32>
    %c1 = arith.constant 1 : index
    %c0_10 = arith.constant 0 : index
    %c0_11 = arith.constant 0 : index
    %15 = vector.load %arg5[%c1, %c0_10, %c0_11] : memref<4x16x128xbf16, #tpu.memory_space<vmem>>, vector<1x16x128xbf16>
    %16 = vector.shape_cast %15 : vector<1x16x128xbf16> to vector<16x128xbf16>
    %cst_12 = arith.constant dense<0.000000e+00> : vector<32x128xf32>
    %17 = tpu.matmul %7, %16, %cst_12 {dimension_numbers = #tpu.dot_dimension_numbers<[1], [0], [0], [1], [0, 0, 1, 1], [], []>} : vector<32x16xbf16>, vector<16x128xbf16>, vector<32x128xf32> -> vector<32x128xf32>
    %18 = arith.addf %14, %17 : vector<32x128xf32>
    %c0_13 = arith.constant 0 : index
    %c0_14 = arith.constant 0 : index
    %19 = vector.load %arg9[%c0_13, %c0_14] : memref<32x128xf32, #tpu.memory_space<vmem>>, vector<32x128xf32>
    tpu.vector_store %arg9[%c0_13, %c0_14], %18 {strides = array<i32>} : memref<32x128xf32, #tpu.memory_space<vmem>>, vector<32x128xf32>,
    %c0_15 = arith.constant 0 : index
    %c0_16 = arith.constant 0 : index
    %20 = vector.load %arg9[%c0_15, %c0_16] : memref<32x128xf32, #tpu.memory_space<vmem>>, vector<24x128xf32>
    %21 = vector.extract_strided_slice %5 {offsets = [8, 0], sizes = [24, 16], strides = [1, 1]} : vector<32x16xbf16> to vector<24x16xbf16>
    %c2 = arith.constant 2 : index
    %c0_17 = arith.constant 0 : index
    %c0_18 = arith.constant 0 : index
    %22 = vector.load %arg5[%c2, %c0_17, %c0_18] : memref<4x16x128xbf16, #tpu.memory_space<vmem>>, vector<1x16x128xbf16>
    %23 = vector.shape_cast %22 : vector<1x16x128xbf16> to vector<16x128xbf16>
    %cst_19 = arith.constant dense<0.000000e+00> : vector<24x128xf32>
    %24 = tpu.matmul %21, %23, %cst_19 {dimension_numbers = #tpu.dot_dimension_numbers<[1], [0], [0], [1], [0, 0, 1, 1], [], []>} : vector<24x16xbf16>, vector<16x128xbf16>, vector<24x128xf32> -> vector<24x128xf32>
    %25 = vector.extract_strided_slice %7 {offsets = [8, 0], sizes = [24, 16], strides = [1, 1]} : vector<32x16xbf16> to vector<24x16xbf16>
    %c3 = arith.constant 3 : index
    %c0_20 = arith.constant 0 : index
    %c0_21 = arith.constant 0 : index
    %26 = vector.load %arg5[%c3, %c0_20, %c0_21] : memref<4x16x128xbf16, #tpu.memory_space<vmem>>, vector<1x16x128xbf16>
    %27 = vector.shape_cast %26 : vector<1x16x128xbf16> to vector<16x128xbf16>
    %cst_22 = arith.constant dense<0.000000e+00> : vector<24x128xf32>
    %28 = tpu.matmul %25, %27, %cst_22 {dimension_numbers = #tpu.dot_dimension_numbers<[1], [0], [0], [1], [0, 0, 1, 1], [], []>} : vector<24x16xbf16>, vector<16x128xbf16>, vector<24x128xf32> -> vector<24x128xf32>
    %29 = arith.addf %24, %28 : vector<24x128xf32>
    %30 = arith.addf %20, %29 : vector<24x128xf32>
    %c0_23 = arith.constant 0 : index
    %c0_24 = arith.constant 0 : index
    %31 = vector.load %arg9[%c0_23, %c0_24] : memref<32x128xf32, #tpu.memory_space<vmem>>, vector<24x128xf32>
    tpu.vector_store %arg9[%c0_23, %c0_24], %30 {strides = array<i32>} : memref<32x128xf32, #tpu.memory_space<vmem>>, vector<24x128xf32>,
    %c24 = arith.constant 24 : index
    %c0_25 = arith.constant 0 : index
    %32 = vector.load %arg9[%c24, %c0_25] : memref<32x128xf32, #tpu.memory_space<vmem>>, vector<8x128xf32>
    %c2_26 = arith.constant 2 : index
    %c0_27 = arith.constant 0 : index
    %c0_28 = arith.constant 0 : index
    %33 = vector.load %arg5[%c2_26, %c0_27, %c0_28] : memref<4x16x128xbf16, #tpu.memory_space<vmem>>, vector<1x16x128xbf16>
    %34 = vector.shape_cast %33 : vector<1x16x128xbf16> to vector<16x128xbf16>
    %cst_29 = arith.constant dense<0.000000e+00> : vector<8x128xf32>
    %35 = tpu.matmul %9, %34, %cst_29 {dimension_numbers = #tpu.dot_dimension_numbers<[1], [0], [0], [1], [0, 0, 1, 1], [], []>} : vector<8x16xbf16>, vector<16x128xbf16>, vector<8x128xf32> -> vector<8x128xf32>
    %c3_30 = arith.constant 3 : index
    %c0_31 = arith.constant 0 : index
    %c0_32 = arith.constant 0 : index
    %36 = vector.load %arg5[%c3_30, %c0_31, %c0_32] : memref<4x16x128xbf16, #tpu.memory_space<vmem>>, vector<1x16x128xbf16>
    %37 = vector.shape_cast %36 : vector<1x16x128xbf16> to vector<16x128xbf16>
    %cst_33 = arith.constant dense<0.000000e+00> : vector<8x128xf32>
    %38 = tpu.matmul %11, %37, %cst_33 {dimension_numbers = #tpu.dot_dimension_numbers<[1], [0], [0], [1], [0, 0, 1, 1], [], []>} : vector<8x16xbf16>, vector<16x128xbf16>, vector<8x128xf32> -> vector<8x128xf32>
    %39 = arith.addf %35, %38 : vector<8x128xf32>
    %40 = arith.addf %32, %39 : vector<8x128xf32>
    %c24_34 = arith.constant 24 : index
    %c0_35 = arith.constant 0 : index
    %41 = vector.load %arg9[%c24_34, %c0_35] : memref<32x128xf32, #tpu.memory_space<vmem>>, vector<8x128xf32>
    tpu.vector_store %arg9[%c24_34, %c0_35], %40 {strides = array<i32>} : memref<32x128xf32, #tpu.memory_space<vmem>>, vector<8x128xf32>,
    %c0_36 = arith.constant 0 : index
    %c0_37 = arith.constant 0 : index
    %42 = vector.load %arg9[%c0_36, %c0_37] : memref<32x128xf32, #tpu.memory_space<vmem>>, vector<32x128xf32>
    %43 = vector.shape_cast %42 : vector<32x128xf32> to vector<4x8x128xf32>
    %44 = arith.truncf %43 : vector<4x8x128xf32> to vector<4x8x128xbf16>
    %c0_38 = arith.constant 0 : index
    %c0_39 = arith.constant 0 : index
    %c0_40 = arith.constant 0 : index
    %c0_41 = arith.constant 0 : index
    %45 = vector.load %arg6[%c0_38, %c0_39, %c0_40, %c0_41] : memref<1x4x8x128xbf16, #tpu.memory_space<vmem>>, vector<1x4x8x128xbf16>
    %46 = vector.shape_cast %45 : vector<1x4x8x128xbf16> to vector<4x8x128xbf16>
    %47 = vector.shape_cast %44 : vector<4x8x128xbf16> to vector<1x4x8x128xbf16>
    tpu.vector_store %arg6[%c0_38, %c0_39, %c0_40, %c0_41], %47 {strides = array<i32>} : memref<1x4x8x128xbf16, #tpu.memory_space<vmem>>, vector<1x4x8x128xbf16>,
    %c0_i32 = arith.constant 0 : i32
    %48 = arith.cmpi eq, %arg2, %c0_i32 : i32
    %49 = arith.extui %48 : i1 to i32
    %c0_i32_42 = arith.constant 0 : i32
    %50 = arith.cmpi ne, %49, %c0_i32_42 : i32
    scf.if %50 {
      %cst_57 = arith.constant 0.000000e+00 : f32
      %68 = vector.broadcast %cst_57 : f32 to vector<1x1x128xf32>
      %c0_58 = arith.constant 0 : index
      %c0_59 = arith.constant 0 : index
      %c0_60 = arith.constant 0 : index
      %69 = vector.load %arg7[%c0_58, %c0_59, %c0_60] : memref<1x1x128xf32, #tpu.memory_space<vmem>>, vector<1x1x128xf32>
      tpu.vector_store %arg7[%c0_58, %c0_59, %c0_60], %68 {strides = array<i32>} : memref<1x1x128xf32, #tpu.memory_space<vmem>>, vector<1x1x128xf32>,
      %cst_61 = arith.constant 0.000000e+00 : f32
      %70 = vector.broadcast %cst_61 : f32 to vector<1x1x128xf32>
      %c0_62 = arith.constant 0 : index
      %c0_63 = arith.constant 0 : index
      %c0_64 = arith.constant 0 : index
      %71 = vector.load %arg8[%c0_62, %c0_63, %c0_64] : memref<1x1x128xf32, #tpu.memory_space<vmem>>, vector<1x1x128xf32>
      tpu.vector_store %arg8[%c0_62, %c0_63, %c0_64], %70 {strides = array<i32>} : memref<1x1x128xf32, #tpu.memory_space<vmem>>, vector<1x1x128xf32>,
    } else {
    }
    %c0_43 = arith.constant 0 : index
    %c0_44 = arith.constant 0 : index
    %c0_45 = arith.constant 0 : index
    %51 = vector.load %arg7[%c0_43, %c0_44, %c0_45] : memref<1x1x128xf32, #tpu.memory_space<vmem>>, vector<1x1x128xf32>
    %52 = vector.shape_cast %51 : vector<1x1x128xf32> to vector<1x128xf32>
    %cst_46 = arith.constant dense<0.000000e+00> : vector<128xf32>
    %53 = vector.multi_reduction <add>, %42, %cst_46 [0] : vector<32x128xf32> to vector<128xf32>
    %54 = vector.shape_cast %53 : vector<128xf32> to vector<1x128xf32>
    %55 = arith.addf %52, %54 : vector<1x128xf32>
    %c0_47 = arith.constant 0 : index
    %c0_48 = arith.constant 0 : index
    %c0_49 = arith.constant 0 : index
    %56 = vector.load %arg7[%c0_47, %c0_48, %c0_49] : memref<1x1x128xf32, #tpu.memory_space<vmem>>, vector<1x1x128xf32>
    %57 = vector.shape_cast %56 : vector<1x1x128xf32> to vector<1x128xf32>
    %58 = vector.shape_cast %55 : vector<1x128xf32> to vector<1x1x128xf32>
    tpu.vector_store %arg7[%c0_47, %c0_48, %c0_49], %58 {strides = array<i32>} : memref<1x1x128xf32, #tpu.memory_space<vmem>>, vector<1x1x128xf32>,
    %c0_50 = arith.constant 0 : index
    %c0_51 = arith.constant 0 : index
    %c0_52 = arith.constant 0 : index
    %59 = vector.load %arg8[%c0_50, %c0_51, %c0_52] : memref<1x1x128xf32, #tpu.memory_space<vmem>>, vector<1x1x128xf32>
    %60 = vector.shape_cast %59 : vector<1x1x128xf32> to vector<1x128xf32>
    %61 = arith.mulf %42, %42 : vector<32x128xf32>
    %cst_53 = arith.constant dense<0.000000e+00> : vector<128xf32>
    %62 = vector.multi_reduction <add>, %61, %cst_53 [0] : vector<32x128xf32> to vector<128xf32>
    %63 = vector.shape_cast %62 : vector<128xf32> to vector<1x128xf32>
    %64 = arith.addf %60, %63 : vector<1x128xf32>
    %c0_54 = arith.constant 0 : index
    %c0_55 = arith.constant 0 : index
    %c0_56 = arith.constant 0 : index
    %65 = vector.load %arg8[%c0_54, %c0_55, %c0_56] : memref<1x1x128xf32, #tpu.memory_space<vmem>>, vector<1x1x128xf32>
    %66 = vector.shape_cast %65 : vector<1x1x128xf32> to vector<1x128xf32>
    %67 = vector.shape_cast %64 : vector<1x128xf32> to vector<1x1x128xf32>
    tpu.vector_store %arg8[%c0_54, %c0_55, %c0_56], %67 {strides = array<i32>} : memref<1x1x128xf32, #tpu.memory_space<vmem>>, vector<1x1x128xf32>,
    return
  }
  func.func @transform_0(%arg0: i32, %arg1: i32, %arg2: i32) -> (i32, i32, i32, i32) {
    %c0_i32 = arith.constant 0 : i32
    %c0_i32_0 = arith.constant 0 : i32
    %c0_i32_1 = arith.constant 0 : i32
    return %arg0, %arg2, %c0_i32, %c0_i32_0 : i32, i32, i32, i32
  }
  func.func @transform_1(%arg0: i32, %arg1: i32, %arg2: i32) -> (i32, i32, i32, i32) {
    %c1_i32 = arith.constant 1 : i32
    %0 = arith.addi %arg2, %c1_i32 : i32
    %c4_i32 = arith.constant 4 : i32
    %1 = arith.muli %0, %c4_i32 : i32
    %c0_i32 = arith.constant 0 : i32
    %c0_i32_0 = arith.constant 0 : i32
    %c0_i32_1 = arith.constant 0 : i32
    return %arg0, %1, %c0_i32, %c0_i32_0 : i32, i32, i32, i32
  }
  func.func @transform_2(%arg0: i32, %arg1: i32, %arg2: i32) -> (i32, i32, i32) {
    %c0_i32 = arith.constant 0 : i32
    %c0_i32_0 = arith.constant 0 : i32
    %c0_i32_1 = arith.constant 0 : i32
    return %c0_i32, %c0_i32_0, %arg1 : i32, i32, i32
  }
  func.func @transform_3(%arg0: i32, %arg1: i32, %arg2: i32) -> (i32, i32, i32, i32) {
    %c0_i32 = arith.constant 0 : i32
    %c0_i32_0 = arith.constant 0 : i32
    return %arg0, %arg2, %c0_i32, %arg1 : i32, i32, i32, i32
  }
  func.func @transform_4(%arg0: i32, %arg1: i32, %arg2: i32) -> (i32, i32, i32) {
    %c0_i32 = arith.constant 0 : i32
    %c0_i32_0 = arith.constant 0 : i32
    return %arg0, %c0_i32, %arg1 : i32, i32, i32
  }
  func.func @transform_5(%arg0: i32, %arg1: i32, %arg2: i32) -> (i32, i32, i32) {
    %c0_i32 = arith.constant 0 : i32
    %c0_i32_0 = arith.constant 0 : i32
    return %arg0, %c0_i32, %arg1 : i32, i32, i32
  }
}

</mosaic_0001>

<bundles_post_ra>
// kernel: tpu_custom_call.1
= control target key start
LH: loop header
LB: loop body
LE: loop exit
PB: predicated region body
PF: predicated region fallthrough
CT: control target
= control target key end

     0   :  { %11 = vsyncpa [#allocation4], 0  ;;  %s1952_s0 = inlined_call_operand.vmem [shape: bf16[2,9,9,16], index: 0, kind: input, shape index: {}]   ;;  %s1953_s1 = inlined_call_operand.vmem [shape: bf16[2,9,9,16], index: 1, kind: input, shape index: {}]   ;;  %s1954_s2 = inlined_call_operand.vmem [shape: bf16[4,16,128], index: 2, kind: input, shape index: {}]   ;;  %s1955_s3 = inlined_call_operand.hbm [shape: bf16[2,8,8,128], index: 3, kind: output, shape index: {0}]   ;;  %s1956_s4 = inlined_call_operand.hbm [shape: f32[2,1,128], index: 4, kind: output, shape index: {1}]   ;;  %s1957_s5 = inlined_call_operand.hbm [shape: f32[2,1,128], index: 5, kind: output, shape index: {2}]  }
   0x1   :  { %13 = vsyncpa [#allocation4 + $0x1], 0 }
   0x2   :  { %14 = vsyncpa [#allocation6], 0 }
   0x3   :  { %16 = vsyncpa [#allocation6 + $0x1], 0  ;;  %s1591_s18 = smov 0   ;;  %s1593_s19 = smov 0  }
   0x4   :  { %s1595_s20 = smov 0   ;;  %s1597_s21 = smov 0  }
   0x5   :  { %s1599_s22 = smov 0   ;;  %s1601_s23 = smov 0  }
   0x6   :  { %s1603_s24 = smov 0   ;;  %s1605_s25 = smov 0  }
   0x7   :  { %s1607_s26 = smov 0   ;;  %s1609_s27 = smov 0  }
   0x8   :  { %s1611_s28 = smov 0  }
   0x9 LB: > { %1965 = sst [smem:[#allocation10_spill]] %s1531_s23  ;;  %s1959_s29 = sadd.s32 4294967295, %s1551_s28   ;;  %s1551_s28 = sphi %s1611_s28, %s22_s28   ;;  %s1547_s27 = sphi %s1609_s27, %s1989_s27   ;;  %s1543_s26 = sphi %s1607_s26, %s1988_s26   ;;  %s1539_s25 = sphi %s1605_s25, %s1987_s25   ;;  %s1535_s24 = sphi %s1603_s24, %s1986_s24   ;;  %s1531_s23 = sphi %s1601_s23, %s1985_s23   ;;  %s1527_s22 = sphi %s1599_s22, %s1994_s22   ;;  %s1523_s21 = sphi %s1597_s21, %s1993_s21   ;;  %s1519_s20 = sphi %s1595_s20, %s1992_s20   ;;  %s1515_s19 = sphi %s1593_s19, %s1991_s19   ;;  %s1511_s18 = sphi %s1591_s18, %s1990_s18  }
   0xa   : > { %1966 = sst [smem:[#allocation11_spill]] %s1543_s26  ;;  %s1958_s30 = sadd.s32 4294967294, %s1551_s28  }
   0xb   : > { %1967 = sst [smem:[#allocation12_spill]] %s1547_s27  ;;  %s34_s6 = sadd.s32 1, %s1543_s26 }
   0xc   : > { %s41_s7 = sadd.s32 1, %s1547_s27  ;;  %p35_p0 = scmp.ge.s32.totalorder %s34_s6, 2 }
   0xd   : > { %s138_s8 = sadd.s32 1, %s1531_s23  ;;  %p148_p1 = scmp.ne.s32.totalorder %s1531_s23, %s1527_s22 }
   0xe   : > { %p1655_p2 = scmp.eq.s32.totalorder %s1959_s29, 3  ;;  %s1996_s6 = smov (%p35_p0, %s34_s6), 0 }
   0xf   : > { %1969 = sst [smem:[#allocation13_spill]] %s1996_s6  ;;  %s1998_s7 = smov (!%p35_p0, %s41_s7), %s1547_s27 }
  0x10   : > { %s132_s10 = ssub.s32 %s1543_s26, %s1996_s6  ;;  %p1666_p3 = por %p1655_p2, %p148_p1 }
  0x11   : > { %p43_p4 = scmp.ge.s32.totalorder %s1998_s7, 2  ;;  %p154_p5 = scmp.ne.s32.totalorder %s1527_s22, %s1523_s21 }
  0x12   : > { %p1674_p6 = scmp.eq.s32.totalorder %s1958_s30, 3  ;;  %s166_s13 = sadd.s32 1, %s1519_s20 }
  0x13   : > { %s2000_s7 = smov (%p43_p4, %s1998_s7), 0  ;;  %p176_p8 = scmp.ne.s32.totalorder %s1519_s20, %s1515_s19 }
  0x14   : > { %1972 = sst [smem:[#allocation14_spill]] %s2000_s7  ;;  %p1683_p7 = por %p1674_p6, %p154_p5 }
  0x15   : > { %s131_s15 = ssub.s32 %s1547_s27, %s2000_s7  ;;  %p182_p9 = scmp.ne.s32.totalorder %s1515_s19, %s1511_s18 }
  0x16   : > { %s133_s16 = sor.u32 %s132_s10, %s131_s15  ;;  %p164_p10 = scmp.eq.s32.totalorder %s131_s15, 0 }
  0x17   : > { %p136_p11 = scmp.eq.s32.totalorder %s133_s16, 0  ;;  %p1695_p12 = por %p176_p8, %p1655_p2 }
  0x18   : > { %s1700_s30 = scalar_select %p164_p10, %s1519_s20, %s166_s13  }
  0x19   : > { %s1703_s29 = scalar_select %p136_p11, %s1531_s23, %s138_s8  }
  0x1a   : > { %p1707_p13 = por %p182_p9, %p1674_p6  ;;  %p1136_p0 = scmp.ge.s32.totalorder %s1551_s28, 1 }
  0x1b   : > { %1975 = sst [smem:[#allocation15_spill]] %s1703_s29  ;;  %p276_p1 = scmp.lt.s32.totalorder %s1551_s28, 5 }
  0x1d   : > { %p277_p4 = pnand %p1136_p0, %p276_p1 }
  0x1e   : > { %s1717_s9 = sshll.u32 (!%p277_p4), %s1535_s24, 2  ;;  %p343_p2 = scmp.lt.s32.totalorder (!%p277_p4), %s1539_s25, 1 }
  0x1f   : > { %280 = sbr.rel (%p277_p4) target bundleno = 351 (0x15f), region = 32  ;;  %p345_p5 = scmp.lt.s32.totalorder (!%p277_p4), %s1717_s9, 8 }
  0x20   : > { %s1193_s13 = sadd.s32 (!%p277_p4), 4, %s1717_s9  ;;  %p1179_p8 = scmp.ne.s32.totalorder (!%p277_p4), %s1535_s24, 0 }
  0x21   : > { %p1747_p6 = scmp.lt.s32.totalorder (!%p277_p4), %s1193_s13, 8 }
  0x24   : > { %v1368_v0 = vld [vmem:[%s1954_s2] sm:$0xff]   ;;  %v1371_v1 = vld [vmem:[%s1954_s2 + $0x8] sm:$0xff]   ;;  %v1372_v2 = vld [vmem:[%s1954_s2 + $0x10] sm:$0xff]   ;;  %s1729_s18 = scalar_select %p343_p2, %s1539_s25, 1  ;;  %vm463_vm0 = vcmask 130048   ;;  %v1553_v39 = vmov 0.0  }
  0x25   : > { %1227 = vmatprep.subr.bf16.mxu1 %v1368_v0  ;;  %1221 = vmatprep.subr.bf16.mxu0 %v1371_v1  ;;  %v1734_v3 = vld [vmem:[%s1954_s2 + $0x18] sm:$0xff]   ;;  %s346_s8 = scalar_select %p345_p5, %s1717_s9, 8  ;;  %vm387_vm1 = vsmask.f32 3328  ;;  %vm388_vm2 = vsmask.f32 7440 }
  0x26   : > { %1228 = vmatpush3.bf16.msra.mxu1 %v1368_v0  ;;  %1222 = vmatpush3.bf16.msra.mxu0 %v1371_v1  ;;  %s1257_s12 = smul.u32 18, %s1729_s18  ;;  %s2002_s13 = smov (!%p1747_p6, %s1193_s13), 8  ;;  %vm1759_vm3 = vmor %vm387_vm1, %vm388_vm2  ;;  %v1376_v49 = vld [vmem:[%s1954_s2 + $0x10] sm:$0xff]   ;;  %vm1554_vm4 = vmmov 0   ;;  %v1377_v63 = vld [vmem:[%s1954_s2 + $0x18] sm:$0xff]  }
  0x27   : > { %1239 = vmatprep.subr.bf16.mxu1 %v1372_v2  ;;  %1233 = vmatprep.subr.bf16.mxu0 %v1734_v3  ;;  %s1139_s15 = sshll.u32 %s346_s8, 1  ;;  %s1142_s26 = sshll.u32 %s2002_s13, 1 }
  0x28   : > { %s349_s16 = sadd.s32 %s1257_s12, %s1139_s15 }
  0x29   : > { %s1140_s27 = sshll.u32 %s349_s16, 2  ;;  %s322_s16 = sand.u32 1, %s1527_s22  }
  0x2a   : > { %s351_s23 = scalar_lea.vmem %s1952_s0, %s1140_s27  ;;  %s1137_s7 = sshll.u32 %s322_s16, 4 }
  0x2b   : > { %v377_v4 = vld [vmem:[%s351_s23] sm:$0xf]  ;;  %v379_v5 = vld [vmem:[%s351_s23 + $0x8] sm:$0xf]  ;;  %v381_v6 = vld [vmem:[%s351_s23 + $0x10] sm:$0xf] }
  0x2c   : > { %v391_v7 = vshrl.u32 %v377_v4, 16  ;;  %v394_v8 = vshll.u32 %v377_v4, 16  ;;  %v405_v9 = vshrl.u32 %v379_v5, 16  ;;  %v408_v10 = vshll.u32 %v379_v5, 16  ;;  %v383_v11 = vld [vmem:[%s351_s23 + $0x18] sm:$0xf] }
  0x2d   : > { %v1151_v12 = vcombine.low %v377_v4, %v379_v5  ;;  %v1152_v13 = vcombine.low %v381_v6, %v383_v11  ;;  %v378_v14 = vld [vmem:[%s351_s23 + $0x4] sm:$0x1]  ;;  %v380_v15 = vld [vmem:[%s351_s23 + $0xc] sm:$0x1]  ;;  %v382_v16 = vld [vmem:[%s351_s23 + $0x14] sm:$0x1]  ;;  %v1165_v17 = vcombine.low %v379_v5, %v381_v6  ;;  %v1166_v46 = vcombine.low %v383_v11, %v383_v11 }
  0x2e   : > { %v393_v18 = vrot.slane %v391_v7, 4  ;;  %v396_v19 = vrot.slane %v394_v8, 5  ;;  %v400_v20 = vshll.u32 %v378_v14, 16  ;;  %v407_v21 = vrot.slane %v405_v9, 4  ;;  %v384_v26 = vld [vmem:[%s351_s23 + $0x1c] sm:$0x1]  ;;  %s366_s23 = sadd.s32 %s1257_s12, %s1142_s26 }
  0x2f   : > { %1229 = vmatprep.mubr.msk.bf16.mxu1 %vm463_vm0, %v1151_v12  ;;  %v410_v22 = vrot.slane %v408_v10, 5  ;;  %v414_v23 = vshll.u32 %v380_v15, 16  ;;  %v419_v24 = vshrl.u32 %v381_v6, 16  ;;  %v422_v25 = vshll.u32 %v381_v6, 16  ;;  %s1143_s27 = sshll.u32 %s366_s23, 2  ;;  %s324_s26 = scalar_lea.vmem [#allocation3], %s1137_s7 }
  0x30   : > { %1230 = vmatmul.mubr.msk.bf16.vlgmr.msra.gmra.mxu1 %vm463_vm0, %v1152_v13  ;;  %v397_v27 = vor.u32 %v396_v19, %v393_v18  ;;  %v402_v28 = vrot.slane %v400_v20, 5  ;;  %v428_v29 = vshll.u32 %v382_v16, 16  ;;  %v433_v30 = vshrl.u32 %v383_v11, 16  ;;  %s368_s8 = scalar_lea.vmem %s1953_s1, %s1143_s27  ;;  %s1980_s23 = sand.u32 1, %s1515_s19  }
  0x31   : > { %v411_v32 = vor.u32 %v410_v22, %v407_v21  ;;  %v416_v33 = vrot.slane %v414_v23, 5  ;;  %v421_v34 = vrot.slane %v419_v24, 4  ;;  %v424_v35 = vrot.slane %v422_v25, 5  ;;  %1240 = vmatpush3.bf16.msra.mxu1 %v1372_v2  ;;  %1241 = vmatprep.mubr.msk.bf16.mxu1 %vm463_vm0, %v1165_v17  ;;  %v385_v57 = vld [vmem:[%s368_s8] sm:$0xf]  ;;  %s1798_s27 = scalar_lea.vmem [#allocation5], %s1980_s23  ;;  %s1981_s29 = smov %s1980_s23 }
  0x32   : > { %v398_v36 = vrot.slane %v397_v27, 4  ;;  %v435_v37 = vrot.slane %v433_v30, 4  ;;  %v436_v38 = vshll.u32 %v383_v11, 16  ;;  %1251 = vmatprep.subr.bf16.mxu1 %v1553_v39  ;;  %v442_v42 = vshll.u32 %v384_v26, 16  ;;  %v386_v58 = vld [vmem:[%s368_s8 + $0x4] sm:$0x1] }
  0x33   : > { %v412_v40 = vrot.slane %v411_v32, 4  ;;  %v425_v41 = vor.u32 %v424_v35, %v421_v34  ;;  %v430_v44 = vrot.slane %v428_v29, 5  ;;  %v1174_v60 = vcombine.low %v385_v57, %v386_v58  ;;  %s1802_s13 = scalar_lea.vmem [#allocation7], %s1981_s29 }
  0x34   : > { %v403_v43 = vsel %vm1759_vm3, %v398_v36, %v402_v28  ;;  %v438_v45 = vrot.slane %v436_v38, 5  ;;  %v444_v51 = vrot.slane %v442_v42, 5 }
  0x35   : > { %v417_v47 = vsel %vm1759_vm3, %v412_v40, %v416_v33  ;;  %v426_v48 = vrot.slane %v425_v41, 4  ;;  %v746_v62 = vshll.u32 %v1174_v60, 16  ;;  %v744_v0 = vshrl.u32 %v1174_v60, 16 }
  0x36   : > { %v439_v50 = vor.u32 %v438_v45, %v435_v37  ;;  %v1146_v52 = vcombine.low %v403_v43, %v417_v47 }
  0x37   : > { %v431_v53 = vsel %vm1759_vm3, %v426_v48, %v430_v44  ;;  %v748_v1 = vrot.slane %v746_v62, 1 }
  0x38   : > { %v440_v54 = vrot.slane %v439_v50, 4  ;;  %1223 = vmatprep.mubr.msk.bf16.mxu0 %vm463_vm0, %v1146_v52  ;;  %1242 = vmatmul.mubr.msk.bf16.vlgmr.msra.gmra.mxu1 %vm463_vm0, %v1166_v46  ;;  %v1160_v56 = vcombine.low %v417_v47, %v431_v53 }
  0x39   : > { %1252 = vmatpush3.bf16.msra.mxu1 %v1376_v49  ;;  %1253 = vmatprep.mubr.msk.bf16.mxu1 %vm1554_vm4, %v1553_v39  ;;  %v749_v2 = vor.u32 %v748_v1, %v744_v0 }
  0x3a   : > { %v445_v55 = vsel %vm1759_vm3, %v440_v54, %v444_v51 }
  0x3b   : > { %v1147_v59 = vcombine.low %v431_v53, %v445_v55  ;;  %v1161_v61 = vcombine.low %v445_v55, %v445_v55 }
  0x3d   : > { %1224 = vmatmul.mubr.msk.bf16.vlgmr.msra.gmra.mxu0 %vm463_vm0, %v1147_v59 }
  0x3e   : > { %1234 = vmatpush3.bf16.msra.mxu0 %v1734_v3  ;;  %1235 = vmatprep.mubr.msk.bf16.mxu0 %vm463_vm0, %v1160_v56 }
  0x3f   : > { %1245 = vmatprep.subr.bf16.mxu0 %v1553_v39 }
  0x40   : > { %1254 = vmatmul.mubr.msk.bf16.vlgmr.msra.gmra.mxu1 %vm463_vm0, %v385_v57 }
  0x45   : > { %1236 = vmatmul.mubr.msk.bf16.vlgmr.msra.gmra.mxu0 %vm463_vm0, %v1161_v61 }
  0x46   : > { %1246 = vmatpush3.bf16.msra.mxu0 %v1377_v63  ;;  %1247 = vmatprep.mubr.msk.bf16.mxu0 %vm1554_vm4, %v1553_v39 }
  0x4d   : > { %1248 = vmatmul.mubr.msk.bf16.vlgmr.msra.gmra.mxu0 %vm463_vm0, %v749_v2 }
  0xf0   : > { %v1231_v3 = vpop.f32.mrf.mxu1 }
  0xf2   : > { %v575_v4 = vpop.f32.mrf.mxu1 }
  0xf4   : > { %v1232_v5 = vpop.f32.mrf.mxu1 }
  0xf6   : > { %v578_v6 = vpop.f32.mrf.mxu1 }
  0xf8   : > { %v1243_v7 = vpop.f32.mrf.mxu1 }
  0xfa   : > { %v713_v8 = vpop.f32.mrf.mxu1 }
  0xfc   : > { %v1244_v9 = vpop.f32.mrf.mxu1 }
  0xfd   : > { %v1225_v10 = vpop.f32.mrf.mxu0 }
  0xfe   : > { %v716_v11 = vpop.f32.mrf.mxu1  ;;  %v584_v28 = vadd.f32 %v1231_v3, %v1225_v10 }
  0xff   : > { %v504_v12 = vpop.f32.mrf.mxu0 }
 0x100   : > { %v842_v13 = vpop.f32.mrf.mxu1  ;;  %v576_v24 = vadd.f32 %v575_v4, %v504_v12 }
 0x101   : > { %v1226_v14 = vpop.f32.mrf.mxu0 }
 0x102   : > { %v1255_v15 = vpop.f32.mrf.mxu1  ;;  %v587_v30 = vadd.f32 %v1232_v5, %v1226_v14 }
 0x103   : > { %v507_v16 = vpop.f32.mrf.mxu0 }
 0x104   : > { %v845_v17 = vpop.f32.mrf.mxu1  ;;  %v579_v25 = vadd.f32 %v578_v6, %v507_v16 }
 0x105   : > { %v1237_v18 = vpop.f32.mrf.mxu0 }
 0x106   : > { %v1256_v19 = vpop.f32.mrf.mxu1  ;;  %v722_v26 = vadd.f32 %v1243_v7, %v1237_v18 }
 0x107   : > { %v651_v20 = vpop.f32.mrf.mxu0 }
 0x108   : > { %v714_v22 = vadd.f32 %v713_v8, %v651_v20  ;;  %v729_v35 = vadd.f32 %v722_v26, %v584_v28 }
 0x109   : > { %v1238_v21 = vpop.f32.mrf.mxu0 }
 0x10a   : > { %v727_v31 = vadd.f32 %v714_v22, %v576_v24 }
 0x10b   : > { %v654_v23 = vpop.f32.mrf.mxu0 }
 0x10c   : > { %v717_v27 = vadd.f32 %v716_v11, %v654_v23 }
 0x10d   : > { %v793_v29 = vpop.f32.mrf.mxu0 }
 0x10e   : > { %v728_v32 = vadd.f32 %v717_v27, %v579_v25  ;;  %v843_v33 = vadd.f32 %v842_v13, %v793_v29 }
 0x10f   : > { %v1249_v34 = vpop.f32.mrf.mxu0 }
 0x110   : > { %v1197_v36 = vpack.c.bf16 %v728_v32, %v727_v31  ;;  %v848_v37 = vadd.f32 %v843_v33, %v587_v30  ;;  %865 = sbr.rel (%p1179_p8) target bundleno = 279 (0x117), region = 36 }
 0x111   : > { %v796_v38 = vpop.f32.mrf.mxu0 }
 0x112   : > { %1198 = vst [vmem:[%s324_s26] sm:$0xff] %v1197_v36   ;;  %v1202_v39 = vpack.c.bf16 %v848_v37, %v729_v35 }
 0x113   : > { %v1250_v40 = vpop.f32.mrf.mxu0 }
 0x114   : > { %1204 = vst [vmem:[%s324_s26 + $0x8] sm:$0xff] %v1202_v39  }
 0x115   : > { %v1555_v41 = vmov 0.0  }
 0x116   : > { %866 = vst [vmem:[%s1798_s27] sm:$0x1] %v1555_v41  ;;  %867 = vst [vmem:[%s1802_s13] sm:$0x1] %v1555_v41 }
 0x117 PF: > { %v869_v42 = vadd.f32 %v728_v32, %v727_v31  ;;  %v881_v43 = vmul.f32 %v727_v31, %v727_v31  ;;  %v882_v44 = vmul.f32 %v728_v32, %v728_v32  ;;  %v883_v45 = vmul.f32 %v729_v35, %v729_v35  ;;  %s1182_s24 = sshll.u32 %s1539_s25, 3  ;;  %s921_s18 = sshll.u32 %s324_s26, 4  ;;  %s1809_s18 = int_to_ptr.vmem [resolvable:$true] %s921_s18 }
 0x118   : > { %v884_v47 = vmul.f32 %v848_v37, %v848_v37  ;;  %s918_s10 = sadd.s32 %s1182_s24, %s1717_s9  ;;  %s1818_s23 = scalar_lea.sflag [#allocation4], %s322_s16 }
 0x119   : > { %v870_v46 = vadd.f32 %v869_v42, %v729_v35  ;;  %v885_v48 = vadd.f32 %v882_v44, %v881_v43  ;;  %s1183_s8 = sshll.u32 %s918_s10, 6  ;;  %s1379_s26 = scalar_lea.vmem %s1809_s18, 256 }
 0x11a   : > { %s1814_s7 = scalar_lea.hbm %s1955_s3, %s1183_s8  ;;  %p1380_p9 = scmp.ne.s32.totalorder %s1809_s18, %s1379_s26 }
 0x11b   : > { %v871_v49 = vadd.f32 %v870_v46, %v848_v37  ;;  %v886_v50 = vadd.f32 %v885_v48, %v883_v45  ;;  %s1556_s9 = smov [#allocation3]  }
 0x11c   : > { %p1381_p10 = pnand %p1380_p9, %p1666_p3  ;;  %s1383_s29 = sshll.u32 %s1556_s9, 4  ;;  %s1384_s29 = int_to_ptr.vmem [resolvable:$false] %s1383_s29 }
 0x11d   : > { %v872_v51 = vrot.slane %v871_v49, 4  ;;  %v887_v52 = vadd.f32 %v886_v50, %v884_v47  ;;  %s1385_s24 = scalar_lea.vmem %s1384_s29, 512  ;;  %p1386_p0 = scmp.lt.s32.totalorder %s1809_s18, %s1384_s29 }
 0x11e   : > { %p1382_p11 = pneg %p1381_p10  ;;  %p1387_p1 = scmp.lt.s32.totalorder %s1385_s24, %s1379_s26 }
 0x11f   : > { %v873_v53 = vadd.f32 %v872_v51, %v871_v49  ;;  %v888_v54 = vrot.slane %v887_v52, 4 }
 0x120   : > { %p1388_p4 = por %p1387_p1, %p1386_p0 }
 0x122   : > { %p1389_p2 = pnand %p1388_p4, %p1382_p11 }
 0x124   : > { %1392 = shalt.err (!%p1389_p2)
}
 0x125   : > { %s1393_s16 = scalar_lea.hbm %s1814_s7, 256  ;;  %s1397_s12 = scalar_lea.hbm %s1955_s3, 1024 }
 0x126   : > { %p1394_p5 = scmp.ne.s32.totalorder %s1814_s7, %s1393_s16  ;;  %p1398_p9 = scmp.lt.s32.totalorder %s1814_s7, %s1955_s3 }
 0x127   : > { %p1399_p10 = scmp.lt.s32.totalorder %s1397_s12, %s1393_s16 }
 0x128   : > { %p1395_p6 = pnand %p1394_p5, %p1666_p3 }
 0x129   : > { %p1400_p11 = por %p1399_p10, %p1398_p9 }
 0x12a   : > { %p1396_p8 = pneg %p1395_p6 }
 0x12c   : > { %p1401_p0 = pnand %p1400_p11, %p1396_p8 }
 0x12e   : > { %1404 = shalt.err (!%p1401_p0)
}
 0x12f   : > { %s1557_s26 = smov 64   ;;  %s1558_s29 = smov 4   ;;  %v874_v55 = vrot.slane %v873_v53, 2  ;;  %v889_v56 = vadd.f32 %v888_v54, %v887_v52  ;;  %v868_v61 = vld [vmem:[%s1798_s27] sm:$0x1] }
 0x130   : > { %1258 = dma.vmem_to_hbm [thread:$0]  (%p1666_p3), %s1809_s18, 256, %s1814_s7, %s1818_s23, %s1557_s26, %s1557_s26, %s1558_s29  }
 0x131   : > { %v875_v57 = vadd.f32 %v874_v55, %v873_v53  ;;  %v890_v58 = vrot.slane %v889_v56, 2  ;;  %s1982_s24 = sadd.s32 4294967295, %s1551_s28   ;;  %s1184_s10 = sshll.u32 %s1539_s25, 4  ;;  %v880_v0 = vld [vmem:[%s1802_s13] sm:$0x1] }
 0x132   : > { %s1843_s16 = sand.u32 1, %s1982_s24   ;;  %s938_s8 = sshll.u32 %s1798_s27, 4  ;;  %s1855_s8 = int_to_ptr.vmem [resolvable:$true] %s938_s8 }
 0x133   : > { %v876_v59 = vrot.slane %v875_v57, 1  ;;  %v891_v60 = vadd.f32 %v890_v58, %v889_v56  ;;  %s952_s11 = sshll.u32 %s1802_s13, 4  ;;  %s1853_s23 = scalar_lea.hbm %s1956_s4, %s1184_s10  ;;  %s1863_s11 = int_to_ptr.vmem [resolvable:$true] %s952_s11 }
 0x134   : > { %s1861_s15 = scalar_lea.hbm %s1957_s5, %s1184_s10  ;;  %s902_s9 = scalar_lea.sflag [#allocation6], %s1843_s16 }
 0x135   : > { %v877_v62 = vadd.f32 %v876_v59, %v875_v57  ;;  %v892_v63 = vrot.slane %v891_v60, 1  ;;  %s1405_s26 = scalar_lea.vmem %s1855_s8, 16  ;;  %s1559_s29 = smov [#allocation5]  }
 0x136   : > { %p1406_p3 = scmp.ne.s32.totalorder %s1855_s8, %s1405_s26  ;;  %s1409_s24 = sshll.u32 %s1559_s29, 4  ;;  %s1410_s24 = int_to_ptr.vmem [resolvable:$false] %s1409_s24 }
 0x137   : > { %v878_v1 = vadd.f32 %v877_v62, %v868_v61  ;;  %v893_v2 = vadd.f32 %v892_v63, %v891_v60  ;;  %s1411_s18 = scalar_lea.vmem %s1410_s24, 32  ;;  %p1412_p2 = scmp.lt.s32.totalorder %s1855_s8, %s1410_s24 }
 0x138   : > { %p1407_p1 = pnand %p1406_p3, %p1695_p12  ;;  %p1413_p5 = scmp.lt.s32.totalorder %s1411_s18, %s1405_s26 }
 0x139   : > { %879 = vst [vmem:[%s1798_s27] sm:$0x1] %v878_v1  ;;  %v894_v3 = vadd.f32 %v893_v2, %v880_v0 }
 0x13a   : > { %p1408_p4 = pneg %p1407_p1  ;;  %p1414_p6 = por %p1413_p5, %p1412_p2 }
 0x13c   : > { %p1415_p8 = pnand %p1414_p6, %p1408_p4 }
 0x13e   : > { %1418 = shalt.err (!%p1415_p8)
}
 0x13f   : > { %s1419_s27 = scalar_lea.hbm %s1853_s23, 16  ;;  %s1423_s25 = scalar_lea.hbm %s1956_s4, 32 }
 0x140   : > { %p1420_p9 = scmp.ne.s32.totalorder %s1853_s23, %s1419_s27  ;;  %p1424_p0 = scmp.lt.s32.totalorder %s1853_s23, %s1956_s4 }
 0x141   : > { %p1425_p3 = scmp.lt.s32.totalorder %s1423_s25, %s1419_s27 }
 0x142   : > { %p1421_p10 = pnand %p1420_p9, %p1695_p12 }
 0x143   : > { %p1426_p1 = por %p1425_p3, %p1424_p0 }
 0x144   : > { %p1422_p11 = pneg %p1421_p10 }
 0x146   : > { %p1427_p4 = pnand %p1426_p1, %p1422_p11 }
 0x148   : > { %1430 = shalt.err (!%p1427_p4)
}
 0x149   : > { %1259 = dma.vmem_to_hbm [thread:$0]  (%p1695_p12), %s1855_s8, 16, %s1853_s23, %s902_s9   ;;  %895 = vst [vmem:[%s1802_s13] sm:$0x1] %v894_v3 }
 0x14a   : > { %s1431_s26 = scalar_lea.vmem %s1863_s11, 16  ;;  %s1560_s24 = smov [#allocation7]  }
 0x14b   : > { %p1432_p2 = scmp.ne.s32.totalorder %s1863_s11, %s1431_s26  ;;  %s1435_s18 = sshll.u32 %s1560_s24, 4  ;;  %s1436_s18 = int_to_ptr.vmem [resolvable:$false] %s1435_s18 }
 0x14c   : > { %s1437_s27 = scalar_lea.vmem %s1436_s18, 32  ;;  %p1438_p8 = scmp.lt.s32.totalorder %s1863_s11, %s1436_s18 }
 0x14d   : > { %p1433_p5 = pnand %p1432_p2, %p1695_p12  ;;  %p1439_p9 = scmp.lt.s32.totalorder %s1437_s27, %s1431_s26 }
 0x14f   : > { %p1434_p6 = pneg %p1433_p5  ;;  %p1440_p10 = por %p1439_p9, %p1438_p8 }
 0x151   : > { %p1441_p11 = pnand %p1440_p10, %p1434_p6 }
 0x153   : > { %1444 = shalt.err (!%p1441_p11)
}
 0x154   : > { %s1445_s8 = scalar_lea.hbm %s1861_s15, 16  ;;  %s1449_s10 = scalar_lea.hbm %s1957_s5, 32 }
 0x155   : > { %p1446_p0 = scmp.ne.s32.totalorder %s1861_s15, %s1445_s8  ;;  %p1450_p4 = scmp.lt.s32.totalorder %s1861_s15, %s1957_s5 }
 0x156   : > { %p1451_p2 = scmp.lt.s32.totalorder %s1449_s10, %s1445_s8 }
 0x157   : > { %p1447_p3 = pnand %p1446_p0, %p1695_p12 }
 0x158   : > { %p1452_p5 = por %p1451_p2, %p1450_p4 }
 0x159   : > { %p1448_p1 = pneg %p1447_p3 }
 0x15b   : > { %p1453_p6 = pnand %p1452_p5, %p1448_p1 }
 0x15d   : > { %1456 = shalt.err (!%p1453_p6)
}
 0x15e   : > { %1260 = dma.vmem_to_hbm [thread:$0]  (%p1695_p12), %s1863_s11, 16, %s1861_s15, %s902_s9  }
 0x15f PF: > { %p1274_p8 = scmp.ge.s32.totalorder %s1551_s28, 2  ;;  %s964_s12 = sand.u32 1, %s1523_s21  }
 0x160   : > { %s965_s29 = scalar_lea.sflag [#allocation4], %s964_s12 }
 0x161   : > { %p1265_p9 = pnand %p1274_p8, %p1683_p7 }
 0x163   : > { %p1266_p10 = pneg %p1265_p9 }
 0x165   : > { %1502 = dma.done.wait (%p1266_p10), %s965_s29, 256  }
 0x166   : > { %1504 = vsyncadd (%p1266_p10), %s965_s29, 4294967040  ;;  %s1983_s26 = sadd.s32 4294967294, %s1551_s28   ;;  %p1268_p11 = pnand %p1274_p8, %p1707_p13 }
 0x167   : > { %s973_s17 = sand.u32 1, %s1983_s26  }
 0x168   : > { %p1269_p0 = pneg %p1268_p11  ;;  %s974_s16 = scalar_lea.sflag [#allocation6], %s973_s17 }
 0x16a   : > { %1506 = dma.done.wait (%p1269_p0), %s974_s16, 32  }
 0x16b   : > { %1508 = vsyncadd (%p1269_p0), %s974_s16, 4294967264  ;;  %s22_s28 = sadd.s32 1, %s1551_s28   ;;  %s1984_s14 = sld [smem:[#allocation10_spill]] }
 0x16c   : > { %p19_p12 = scmp.ge.s32.totalorder %s22_s28, 6   ;;  %s1985_s23 = sld [smem:[#allocation15_spill]] }
 0x16d   : > { %s1986_s24 = sld [smem:[#allocation11_spill]]  ;;  %s1990_s18 = smov %s1515_s19 }
 0x16e   : > { %s1987_s25 = sld [smem:[#allocation12_spill]]  ;;  %s1991_s19 = smov %s1519_s20 }
 0x16f   : > { %s1988_s26 = sld [smem:[#allocation13_spill]]  ;;  %s1992_s20 = smov %s1700_s30 }
 0x170   : > { %s1989_s27 = sld [smem:[#allocation14_spill]]  ;;  %s1993_s21 = smov %s1527_s22 }
 0x171   : > { %s1994_s22 = smov %s1984_s14  ;;  %21 = sbr.rel (!%p19_p12) target bundleno = 9 (0x9), region = 112 }
 0x176   :  { %986 = vsyncpa [#allocation4], 1 }
 0x177   :  { %988 = vsyncpa [#allocation4 + $0x1], 1 }
 0x178   :  { %989 = vsyncpa [#allocation6], 1 }
 0x179   :  { %991 = vsyncpa [#allocation6 + $0x1], 1 }

</bundles_post_ra>
